<compile_context>
chip_gen: v5e
topology: v5e:2x2
jax: 0.10.0
libtpu: 0.0.40
codegen_flags: <defaults>
</compile_context>

<pallas_src>
import math

import jax
import jax.numpy as jnp
from jax import lax
from jax.experimental import pallas as pl
from jax.experimental.pallas import tpu as pltpu


# --------------------------------------------------------------------------
# TPU-generation-aware configuration
# --------------------------------------------------------------------------
def _tpu_config():
    """Returns (vmem_limit_bytes, use_bf16_exp, min_parallel_blocks)."""
    kind = ""
    try:
        kind = (jax.devices()[0].device_kind or "").lower()
    except Exception:
        pass
    is_v7 = "v7" in kind
    is_v6 = "v6" in kind
    is_v5 = "v5" in kind
    # v5*/v6* have 128 MiB physical VMEM; v7x only 64 MiB -> keep headroom.
    vmem_limit = (96 if (is_v5 or is_v6) else 48) * 1024 * 1024
    # bf16 EUP/VPU exists on v6e/v7x; never use bf16 exp on v5e / unknown HW.
    use_bf16_exp = is_v6 or is_v7
    # v7x shards "parallel" grid axes across 2 TensorCores -> want >= 2 blocks.
    min_parallel_blocks = 2 if is_v7 else 1
    return vmem_limit, use_bf16_exp, min_parallel_blocks


# --------------------------------------------------------------------------
# Tile helpers.  M/N axes use cdiv grids (Pallas masks partial edge blocks);
# only the K reduction axis requires exact divisibility (accumulator safety).
# --------------------------------------------------------------------------
def _row_tile(dim, cap, min_blocks=1):
    """Sublane-axis tile (multiple of 8, or the full dim)."""
    if min_blocks > 1 and dim >= 2 * 128:
        cap = min(cap, -(-dim // min_blocks))  # ceil(dim / min_blocks)
    if dim <= cap:
        return dim
    t = min(dim, cap)
    return max(8, t - t % 8)


def _col_tile(dim, cap):
    """Lane-axis tile (multiple of 128, or the full dim)."""
    if dim <= cap:
        return dim
    return max(128, cap - cap % 128)


def _reduce_tile(dim, cap):
    """Reduction-axis tile: must divide dim exactly (full dim always does)."""
    if dim <= cap:
        return dim
    t = cap - cap % 128
    while t >= 128:
        if dim % t == 0:
            return t
        t -= 128
    return dim


# --------------------------------------------------------------------------
# Tiled linear kernel: out = x @ W + b   (W stored as (in, out))
# --------------------------------------------------------------------------
def _linear_kernel(x_ref, w_ref, b_ref, o_ref, acc_ref):
    k = pl.program_id(2)

    @pl.when(k == 0)
    def _():
        acc_ref[...] = jnp.zeros_like(acc_ref)

    acc_ref[...] += jnp.dot(x_ref[...], w_ref[...],
                            preferred_element_type=jnp.float32)

    @pl.when(k == pl.num_programs(2) - 1)
    def _():
        # bias added exactly once, at the last reduction step
        o_ref[...] = (acc_ref[...] + b_ref[...]).astype(o_ref.dtype)


def linear(x2d, w, b, out_dtype=None, *, tm_cap=512, tn_cap=1024, tk_cap=1024,
           min_m_blocks=1, vmem_limit=48 * 1024 * 1024):
    """x2d: (M, Din), w: (Din, Dout), b: (Dout,) -> (M, Dout)."""
    M, Din = x2d.shape
    Dout = w.shape[1]
    out_dtype = out_dtype or x2d.dtype

    tm = _row_tile(M, tm_cap, min_m_blocks)
    tn = _col_tile(Dout, tn_cap)
    tk = _reduce_tile(Din, tk_cap)
    assert Din % tk == 0  # reduction axis must tile exactly
    grid = (pl.cdiv(M, tm), pl.cdiv(Dout, tn), Din // tk)

    return pl.pallas_call(
        _linear_kernel,
        out_shape=jax.ShapeDtypeStruct((M, Dout), out_dtype),
        grid=grid,
        in_specs=[
            pl.BlockSpec((tm, tk), lambda i, j, k: (i, k)),
            pl.BlockSpec((tk, tn), lambda i, j, k: (k, j)),
            pl.BlockSpec((1, tn), lambda i, j, k: (0, j)),
        ],
        out_specs=pl.BlockSpec((tm, tn), lambda i, j, k: (i, j)),
        scratch_shapes=[pltpu.VMEM((tm, tn), jnp.float32)],
        compiler_params=pltpu.CompilerParams(
            dimension_semantics=("parallel", "parallel", "arbitrary"),
            vmem_limit_bytes=vmem_limit),
    )(x2d, w, b.reshape(1, Dout).astype(jnp.float32))


# --------------------------------------------------------------------------
# Fused Q-projection + reprogramming attention + output projection kernel
#   x  : (tm, d_model) row tile of the flattened target embedding
#   wq : (d_model, H*E), K/V : (S, H*E), wo : (H*E, d_llm)   (all VMEM-resident)
#   out: (tm, d_llm)  lane-dense f32 block
# --------------------------------------------------------------------------
def _make_fused_attn_kernel(H, E, use_bf16_exp):
    scale = 1.0 / math.sqrt(E)
    exp_dtype = jnp.bfloat16 if use_bf16_exp else jnp.float32

    def kernel(x_ref, wq_ref, bq_ref, k_ref, v_ref, wo_ref, bo_ref, o_ref):
        # Q projection fused in; 1/sqrt(E) folded into q (single (tm,H*E) mul).
        q_all = ((jnp.dot(x_ref[...], wq_ref[...],
                          preferred_element_type=jnp.float32)
                  + bq_ref[...]) * scale).astype(jnp.bfloat16)      # (tm, H*E)
        k_all = k_ref[...]                                          # (S,  H*E)
        v_all = v_ref[...]                                          # (S,  H*E)
        wo_all = wo_ref[...]                                        # (H*E, d_llm)

        acc = jnp.zeros(o_ref.shape, jnp.float32)                   # (tm, d_llm)
        for h in range(H):                       # static unroll over heads
            lo = h * E
            q_h = q_all[:, lo:lo + E]
            k_h = k_all[:, lo:lo + E]
            v_h = v_all[:, lo:lo + E]
            # scores = (q_h * scale) @ k_h^T without materializing K^T
            scores = lax.dot_general(
                q_h, k_h, (((1,), (1,)), ((), ())),
                preferred_element_type=jnp.float32)                 # (tm, S)
            m = jnp.max(scores, axis=-1, keepdims=True)
            # bf16 exp on v6e/v7x (denominator / accumulation stay f32)
            p = jnp.exp((scores - m).astype(exp_dtype))             # (tm, S)
            denom = jnp.sum(p.astype(jnp.float32), axis=-1, keepdims=True)
            # TODO(synk): attention dropout (p=0.1) omitted -- eval semantics.
            pv = jnp.dot(p.astype(jnp.bfloat16), v_h,
                         preferred_element_type=jnp.float32)        # (tm, E)
            # normalize AFTER P@V: elementwise pass is (tm,E), not (tm,S)
            out_h = pv * pl.reciprocal(denom, approx=True)          # EUP slot
            # output projection fused in: accumulate this head's contribution
            acc = acc + jnp.dot(out_h.astype(jnp.bfloat16),
                                wo_all[lo:lo + E, :],
                                preferred_element_type=jnp.float32)
        o_ref[...] = (acc + bo_ref[...]).astype(o_ref.dtype)

    return kernel


def fused_reprogramming_attention(x, wq, bq, k, v, wo, bo, n_heads, *,
                                  tm_cap=256, vmem_limit, use_bf16_exp,
                                  min_m_blocks):
    """x: (M, d_model), k/v: (S, H*E), wo: (H*E, d_llm) -> (M, d_llm) f32."""
    M, d_model = x.shape
    S, HE = k.shape
    d_llm = wo.shape[1]
    E = HE // n_heads

    tm = _row_tile(M, tm_cap, min_m_blocks)
    grid = (pl.cdiv(M, tm),)

    return pl.pallas_call(
        _make_fused_attn_kernel(n_heads, E, use_bf16_exp),
        out_shape=jax.ShapeDtypeStruct((M, d_llm), jnp.float32),
        grid=grid,
        in_specs=[
            pl.BlockSpec((tm, d_model), lambda i: (i, 0)),
            pl.BlockSpec((d_model, HE), lambda i: (0, 0)),   # resident
            pl.BlockSpec((1, HE), lambda i: (0, 0)),          # resident
            pl.BlockSpec((S, HE), lambda i: (0, 0)),          # resident
            pl.BlockSpec((S, HE), lambda i: (0, 0)),          # resident
            pl.BlockSpec((HE, d_llm), lambda i: (0, 0)),      # resident
            pl.BlockSpec((1, d_llm), lambda i: (0, 0)),       # resident
        ],
        out_specs=pl.BlockSpec((tm, d_llm), lambda i: (i, 0)),
        compiler_params=pltpu.CompilerParams(
            dimension_semantics=("parallel",),
            vmem_limit_bytes=vmem_limit),
    )(x, wq, bq.reshape(1, HE).astype(jnp.float32), k, v, wo,
      bo.reshape(1, d_llm).astype(jnp.float32))


# --------------------------------------------------------------------------
# Full ReprogrammingLayer forward
# --------------------------------------------------------------------------
def reprogramming_layer_forward(params, target_embedding, source_embedding,
                                value_embedding, n_heads):
    B, L, d_model = target_embedding.shape
    S, d_llm = source_embedding.shape
    HE = params["wq"].shape[1]

    vmem_limit, use_bf16_exp, min_blocks = _tpu_config()

    bf16 = jnp.bfloat16
    tgt = target_embedding.reshape(B * L, d_model).astype(bf16)
    src = source_embedding.astype(bf16)
    wk, wv = params["wk"].astype(bf16), params["wv"].astype(bf16)

    # K / V projections (tiled Pallas matmuls, bf16 MXU / f32 accumulation)
    if source_embedding is value_embedding:
        # TimeLLM call site: same tensor -> one fused matmul over [wk|wv]
        w_kv = jnp.concatenate([wk, wv], axis=1)                 # (d_llm, 2*HE)
        b_kv = jnp.concatenate([params["bk"], params["bv"]])
        kv = linear(src, w_kv, b_kv, min_m_blocks=min_blocks,
                    vmem_limit=vmem_limit)                       # (S, 2*HE)
        k, v = kv[:, :HE], kv[:, HE:]
    else:
        k = linear(src, wk, params["bk"], min_m_blocks=min_blocks,
                   vmem_limit=vmem_limit)                        # (S, HE)
        v = linear(value_embedding.astype(bf16), wv, params["bv"],
                   min_m_blocks=min_blocks, vmem_limit=vmem_limit)

    # Fused Q-projection + attention + output projection (single pallas_call)
    out = fused_reprogramming_attention(
        tgt, params["wq"].astype(bf16), params["bq"], k, v,
        params["wo"].astype(bf16), params["bo"], n_heads,
        vmem_limit=vmem_limit, use_bf16_exp=use_bf16_exp,
        min_m_blocks=min_blocks)                                 # (B*L, d_llm)
    return out.reshape(B, L, d_llm)


# --------------------------------------------------------------------------
# Pure-JAX reference (mirrors the PyTorch module, eval mode)
# --------------------------------------------------------------------------
def reference_forward(params, target, source, value, n_heads):
    B, L, d_model = target.shape
    S, d_llm = source.shape
    H = n_heads
    d_keys = params["wq"].shape[1] // H

    q = (target.reshape(B * L, d_model) @ params["wq"] + params["bq"]).reshape(B, L, H, d_keys)
    k = (source @ params["wk"] + params["bk"]).reshape(S, H, d_keys)
    v = (value @ params["wv"] + params["bv"]).reshape(S, H, d_keys)

    scale = 1.0 / math.sqrt(d_keys)
    scores = jnp.einsum("blhe,she->bhls", q, k)
    a = jax.nn.softmax(scale * scores, axis=-1)
    out = jnp.einsum("bhls,she->blhe", a, v).reshape(B, L, H * d_keys)
    return (out.reshape(B * L, H * d_keys) @ params["wo"] + params["bo"]).reshape(B, L, d_llm)


# --------------------------------------------------------------------------
# Deterministic parameter init (PyTorch nn.Linear default: U(-1/sqrt(fan_in), +))
# --------------------------------------------------------------------------
def init_params(key, d_model, n_heads, d_llm, d_keys=None):
    d_keys = d_keys or d_model // n_heads
    dkh = d_keys * n_heads

    def lin_init(k, fan_in, fan_out):
        kw, kb = jax.random.split(k)
        bound = 1.0 / math.sqrt(fan_in)
        w = jax.random.uniform(kw, (fan_in, fan_out), jnp.float32, -bound, bound)
        b = jax.random.uniform(kb, (fan_out,), jnp.float32, -bound, bound)
        return w, b

    k1, k2, k3, k4 = jax.random.split(key, 4)
    wq, bq = lin_init(k1, d_model, dkh)
    wk, bk = lin_init(k2, d_llm, dkh)
    wv, bv = lin_init(k3, d_llm, dkh)
    wo, bo = lin_init(k4, dkh, d_llm)
    return dict(wq=wq, bq=bq, wk=wk, bk=bk, wv=wv, bv=bv, wo=wo, bo=bo)


if __name__ == "__main__":
    # Small shapes consistent with the module's forward signature
    B, L, S = 2, 16, 24
    d_model, n_heads, d_llm = 32, 4, 64

    key = jax.random.PRNGKey(0)
    kp, kt, ks, kv = jax.random.split(key, 4)

    params = init_params(kp, d_model, n_heads, d_llm)
    target = jax.random.normal(kt, (B, L, d_model), jnp.float32)
    source = jax.random.normal(ks, (S, d_llm), jnp.float32)
    value = jax.random.normal(kv, (S, d_llm), jnp.float32)

    # 1) general path: distinct source / value embeddings
    out = reprogramming_layer_forward(params, target, source, value, n_heads)
    out = jax.block_until_ready(out)
    ref = reference_forward(params, target, source, value, n_heads)
    assert out.shape == (B, L, d_llm), out.shape
    # bf16 MXU operands + (bf16 exp on v6e/v7x) + approx reciprocal -> loose tol
    assert jnp.allclose(out, ref, atol=5e-2, rtol=5e-2), \
        float(jnp.max(jnp.abs(out - ref)))

    # 2) TimeLLM call-site path: source is value -> fused [wk|wv] projection
    out2 = reprogramming_layer_forward(params, target, source, source, n_heads)
    out2 = jax.block_until_ready(out2)
    ref2 = reference_forward(params, target, source, source, n_heads)
    assert jnp.allclose(out2, ref2, atol=5e-2, rtol=5e-2), \
        float(jnp.max(jnp.abs(out2 - ref2)))

    print("KERNEL_OK")
</pallas_src>

<mosaic_0001>
module attributes {stable_mosaic.version = 11 : i64} {
  func.func @_linear_kernel(%arg0: i32, %arg1: i32, %arg2: i32, %arg3: memref<24x64xbf16, #tpu.memory_space<vmem>>, %arg4: memref<64x32xbf16, #tpu.memory_space<vmem>>, %arg5: memref<1x32xf32, #tpu.memory_space<vmem>>, %arg6: memref<24x32xbf16, #tpu.memory_space<vmem>>, %arg7: memref<24x32xf32, #tpu.memory_space<vmem>>) attributes {dimension_semantics = [#tpu.dimension_semantics<parallel>, #tpu.dimension_semantics<parallel>, #tpu.dimension_semantics<arbitrary>], iteration_bounds = array<i64: 1, 1, 1>, scalar_prefetch = 0 : i64, scratch_operands = 1 : i64, tpu.core_type = #tpu.core_type<tc>, window_params = [{transform_indices = @transform_0, window_bounds = array<i64: 24, 64>}, {transform_indices = @transform_1, window_bounds = array<i64: 64, 32>}, {transform_indices = @transform_2, window_bounds = array<i64: 1, 32>}, {transform_indices = @transform_3, window_bounds = array<i64: 24, 32>}]} {
    %c0_i32 = arith.constant 0 : i32
    %0 = arith.cmpi eq, %arg2, %c0_i32 : i32
    %1 = arith.extui %0 : i1 to i32
    %c0_i32_0 = arith.constant 0 : i32
    %2 = arith.cmpi ne, %1, %c0_i32_0 : i32
    scf.if %2 {
      %cst_10 = arith.constant 0.000000e+00 : f32
      %12 = vector.broadcast %cst_10 : f32 to vector<24x32xf32>
      %c0_11 = arith.constant 0 : index
      %c0_12 = arith.constant 0 : index
      %13 = vector.load %arg7[%c0_11, %c0_12] : memref<24x32xf32, #tpu.memory_space<vmem>>, vector<24x32xf32>
      tpu.vector_store %arg7[%c0_11, %c0_12], %12 {strides = array<i32>} : memref<24x32xf32, #tpu.memory_space<vmem>>, vector<24x32xf32>,
    } else {
    }
    %c0 = arith.constant 0 : index
    %c0_1 = arith.constant 0 : index
    %3 = vector.load %arg7[%c0, %c0_1] : memref<24x32xf32, #tpu.memory_space<vmem>>, vector<24x32xf32>
    %c0_2 = arith.constant 0 : index
    %c0_3 = arith.constant 0 : index
    %4 = vector.load %arg3[%c0_2, %c0_3] : memref<24x64xbf16, #tpu.memory_space<vmem>>, vector<24x64xbf16>
    %c0_4 = arith.constant 0 : index
    %c0_5 = arith.constant 0 : index
    %5 = vector.load %arg4[%c0_4, %c0_5] : memref<64x32xbf16, #tpu.memory_space<vmem>>, vector<64x32xbf16>
    %cst = arith.constant dense<0.000000e+00> : vector<24x32xf32>
    %6 = tpu.matmul %4, %5, %cst {dimension_numbers = #tpu.dot_dimension_numbers<[1], [0], [0], [1], [0, 0, 1, 1], [], []>} : vector<24x64xbf16>, vector<64x32xbf16>, vector<24x32xf32> -> vector<24x32xf32>
    %7 = arith.addf %3, %6 : vector<24x32xf32>
    %c0_6 = arith.constant 0 : index
    %c0_7 = arith.constant 0 : index
    %8 = vector.load %arg7[%c0_6, %c0_7] : memref<24x32xf32, #tpu.memory_space<vmem>>, vector<24x32xf32>
    tpu.vector_store %arg7[%c0_6, %c0_7], %7 {strides = array<i32>} : memref<24x32xf32, #tpu.memory_space<vmem>>, vector<24x32xf32>,
    %c0_i32_8 = arith.constant 0 : i32
    %9 = arith.cmpi eq, %arg2, %c0_i32_8 : i32
    %10 = arith.extui %9 : i1 to i32
    %c0_i32_9 = arith.constant 0 : i32
    %11 = arith.cmpi ne, %10, %c0_i32_9 : i32
    scf.if %11 {
      %c0_10 = arith.constant 0 : index
      %c0_11 = arith.constant 0 : index
      %12 = vector.load %arg7[%c0_10, %c0_11] : memref<24x32xf32, #tpu.memory_space<vmem>>, vector<24x32xf32>
      %c0_12 = arith.constant 0 : index
      %c0_13 = arith.constant 0 : index
      %13 = vector.load %arg5[%c0_12, %c0_13] : memref<1x32xf32, #tpu.memory_space<vmem>>, vector<1x32xf32>
      %14 = vector.broadcast %13 : vector<1x32xf32> to vector<24x32xf32>
      %15 = arith.addf %12, %14 : vector<24x32xf32>
      %16 = arith.truncf %15 : vector<24x32xf32> to vector<24x32xbf16>
      %c0_14 = arith.constant 0 : index
      %c0_15 = arith.constant 0 : index
      %17 = vector.load %arg6[%c0_14, %c0_15] : memref<24x32xbf16, #tpu.memory_space<vmem>>, vector<24x32xbf16>
      tpu.vector_store %arg6[%c0_14, %c0_15], %16 {strides = array<i32>} : memref<24x32xbf16, #tpu.memory_space<vmem>>, vector<24x32xbf16>,
    } else {
    }
    return
  }
  func.func @transform_0(%arg0: i32, %arg1: i32, %arg2: i32) -> (i32, i32) {
    %c0_i32 = arith.constant 0 : i32
    return %arg0, %arg2 : i32, i32
  }
  func.func @transform_1(%arg0: i32, %arg1: i32, %arg2: i32) -> (i32, i32) {
    %c0_i32 = arith.constant 0 : i32
    return %arg2, %arg1 : i32, i32
  }
  func.func @transform_2(%arg0: i32, %arg1: i32, %arg2: i32) -> (i32, i32) {
    %c0_i32 = arith.constant 0 : i32
    %c0_i32_0 = arith.constant 0 : i32
    return %c0_i32, %arg1 : i32, i32
  }
  func.func @transform_3(%arg0: i32, %arg1: i32, %arg2: i32) -> (i32, i32) {
    %c0_i32 = arith.constant 0 : i32
    return %arg0, %arg1 : i32, i32
  }
}

</mosaic_0001>

<bundles_post_ra>
// kernel: tpu_custom_call.1
= control target key start
LH: loop header
LB: loop body
LE: loop exit
PB: predicated region body
PF: predicated region fallthrough
CT: control target
= control target key end

     0   :  { %vm20_vm0 = vcmask 261120   ;;  %v202_v1 = vmov 0.0   ;;  %s256_s0 = inlined_call_operand.vmem [shape: bf16[24,64], index: 0, kind: input, shape index: {}]   ;;  %s257_s1 = inlined_call_operand.vmem [shape: bf16[64,32], index: 1, kind: input, shape index: {}]   ;;  %s258_s2 = inlined_call_operand.vmem [shape: f32[1,32], index: 2, kind: input, shape index: {}]   ;;  %s259_s3 = inlined_call_operand.hbm [shape: bf16[24,32], index: 3, kind: output, shape index: {}]  }
   0x1   :  { %v166_v0 = vld [vmem:[%s257_s1 + $0x18] sm:$0xff]  ;;  %21 = vst.msk [vmem:[#allocation2] sm:$0xff] %vm20_vm0, %v202_v1  ;;  %v165_v2 = vld [vmem:[%s257_s1 + $0x10] sm:$0xff] }
   0x2   :  { %81 = vmatpush.bf16.msra.mxu0 %v166_v0  ;;  %167 = vmatpush.bf16.msra.mxu1 %v166_v0  ;;  %22 = vst.msk [vmem:[#allocation2 + $0x8] sm:$0xff] %vm20_vm0, %v202_v1 }
   0x3   :  { %8 = vsyncpa [#allocation4], 0  ;;  %23 = vst.msk [vmem:[#allocation2 + $0x10] sm:$0xff] %vm20_vm0, %v202_v1  ;;  %v164_v3 = vld [vmem:[%s257_s1 + $0x8] sm:$0xff]  ;;  %v163_v6 = vld [vmem:[%s257_s1] sm:$0xff]  ;;  %vm70_vm1 = vcmask 523264  }
   0x4   :  { %v29_v4 = vld [vmem:[%s256_s0 + $0x8] sm:$0xf]  ;;  %v162_v7 = vld [vmem:[%s256_s0] sm:$0xff]  ;;  %vm118_vm2 = vcmask 257024   ;;  %s203_s0 = smov [#allocation3]   ;;  %s204_s28 = smov 64  }
   0x5   :  { %v43_v5 = vunpack.c.l.b16 %v29_v4  ;;  %v175_v16 = vld [vmem:[%s258_s2] ss:$0 sm:$0xff]  ;;  %s126_s25 = sshll.u32 %s203_s0, 4  ;;  %s128_s2 = sshll.u32 %s259_s3, 4  ;;  %s127_s25 = int_to_ptr.vmem [resolvable:$true] %s126_s25  ;;  %s129_s2 = int_to_ptr.hbm [resolvable:$true] %s128_s2 }
   0x6   :  { %82 = vmatpush.bf16.msra.mxu0 %v165_v2  ;;  %168 = vmatpush.bf16.msra.mxu1 %v165_v2  ;;  %s205_s29 = smov 4  }
   0x7   :  { %v45_v8 = vpack.c.b16 %v43_v5, %v43_v5 }
   0x8   :  { %v24_v9 = vld [vmem:[#allocation2] sm:$0xff] }
   0x9   :  { %v25_v15 = vld [vmem:[#allocation2 + $0x8] sm:$0xff] }
   0xa   :  { %83 = vmatpush.bf16.msra.mxu0 %v164_v3  ;;  %169 = vmatpush.bf16.msra.mxu1 %v164_v3  ;;  %v26_v10 = vld [vmem:[#allocation2 + $0x10] sm:$0xff] }
   0xe   :  { %84 = vmatpush.bf16.msra.mxu0 %v163_v6  ;;  %170 = vmatpush.bf16.msra.mxu1 %v163_v6 }
  0x11   :  { %160 = vmatmul.msk.bf16.vlgmr.msra.gmra.mxu0 %vm70_vm1, %v162_v7  ;;  %161 = vmatmul.msk.bf16.vlgmr.msra.gmra.mxu1 %vm70_vm1, %v45_v8 }
  0x8e   :  { %v86_v11 = vpop.f32.mrf.mxu0  ;;  %v91_v12 = vpop.f32.mrf.mxu1 }
  0x8f   :  { %v95_v13 = vadd.f32 %v86_v11, %v24_v9  ;;  %v97_v14 = vadd.f32 %v91_v12, %v26_v10 }
  0x91   :  { %99 = vst.msk [vmem:[#allocation2] sm:$0xff] %vm20_vm0, %v95_v13 }
  0x92   :  { %101 = vst.msk [vmem:[#allocation2 + $0x10] sm:$0xff] %vm20_vm0, %v97_v14 }
  0x96   :  { %v88_v17 = vpop.f32.mrf.mxu0  ;;  %v93_v18 = vpop.f32.mrf.mxu1 }
  0x97   :  { %v96_v19 = vadd.f32 %v88_v17, %v25_v15 }
  0x98   :  { %v105_v20 = vld [vmem:[#allocation2] sm:$0xff] }
  0x99   :  { %100 = vst.msk [vmem:[#allocation2 + $0x8] sm:$0xff] %vm20_vm0, %v96_v19  ;;  %v107_v21 = vld [vmem:[#allocation2 + $0x10] sm:$0xff]  ;;  %v112_v22 = vadd.f32 %v175_v16, %v105_v20 }
  0x9a   :  { %v114_v23 = vadd.f32 %v175_v16, %v107_v21 }
  0x9b   :  { %v115_v24 = vpack.c.bf16 %v112_v22, %v112_v22 }
  0x9c   :  { %v117_v25 = vpack.c.bf16 %v114_v23, %v114_v23 }
  0x9d   :  { %119 = vst.msk [vmem:[#allocation3] sm:$0xf] %vm118_vm2, %v115_v24 }
  0x9e   :  { %121 = vst.msk [vmem:[#allocation3 + $0x8] sm:$0xf] %vm118_vm2, %v117_v25 }
  0xa0   :  { %v106_v26 = vld [vmem:[#allocation2 + $0x8] sm:$0xff] }
  0xa1   :  { %v113_v27 = vadd.f32 %v175_v16, %v106_v26 }
  0xa3   :  { %v116_v28 = vpack.c.bf16 %v113_v27, %v113_v27 }
  0xa5   :  { %120 = vst.msk [vmem:[#allocation3 + $0x4] sm:$0xf] %vm118_vm2, %v116_v28 }
  0xa6   :  { %134 = dma.vmem_to_hbm [thread:$0]  %s127_s25, 192, %s129_s2, [#allocation4], %s204_s28, %s204_s28, %s205_s29  }
  0xa7   :  { %200 = dma.done.wait [#allocation4], 192  }
  0xa8   :  { %201 = vsyncadd [#allocation4], 4294967104 }
  0xa9   :  { %139 = vsyncpa [#allocation4], 1 }

</bundles_post_ra>
